<compile_context>
chip_gen: v6e
topology: v6e:2x2x1
jax: 0.10.0
libtpu: 0.0.40
codegen_flags: <defaults>
</compile_context>

<pallas_src>
import functools
import math

import jax
import jax.numpy as jnp
from jax import lax
from jax.experimental import pallas as pl
from jax.experimental.pallas import tpu as pltpu


def _sigmoid(x):
    # exp() runs on the EUP; exact divide keeps f32 headroom for the tolerance.
    return 1.0 / (1.0 + jnp.exp(-x))


def _cnn_cbam_kernel(x_ref, wconv_ref, bconv_ref, w1_ref, b1_ref, w2_ref,
                     b2_ref, wsp_ref, rmask_ref, cmask_ref, o_ref, *, H, W, bt):
    HW = H * W
    L = bt * HW
    Cout = o_ref.shape[0]
    inv_hw = 1.0 / HW
    inv_c = 1.0 / Cout

    def shift(v, s):
        # v[:, i] <- v[:, i + s]; wrap-around / cross-image garbage is killed by
        # the row/col validity masks applied right after each shift.
        return v if s == 0 else pltpu.roll(v, (-s) % L, axis=1)

    x = x_ref[...]                                                  # (Cin, L)

    # ---- Convblock: 3x3 "same" conv (BN folded) + ReLU as one K=9*Cin matmul.
    rstack = jnp.concatenate(
        [shift(x, (r - 1) * W) * rmask_ref[r + 2:r + 3, :] for r in range(3)],
        axis=0)                                                     # (3*Cin, L)
    panel = jnp.concatenate(
        [shift(rstack, c - 1) * cmask_ref[c + 2:c + 3, :] for c in range(3)],
        axis=0)                                                     # (9*Cin, L)
    h = jnp.maximum(
        jnp.dot(wconv_ref[...], panel, preferred_element_type=jnp.float32)
        + bconv_ref[...], 0.0)                                      # (Cout, L)

    # ---- Channel attention: shared MLP once on a (Cout, 2*bt) lane panel.
    pmax = [jnp.max(h[:, b * HW:(b + 1) * HW], axis=1, keepdims=True)
            for b in range(bt)]
    pavg = [jnp.sum(h[:, b * HW:(b + 1) * HW], axis=1, keepdims=True) * inv_hw
            for b in range(bt)]
    p = jnp.concatenate(pmax + pavg, axis=1)                        # (Cout, 2*bt)
    z = jnp.maximum(
        jnp.dot(w1_ref[...], p, preferred_element_type=jnp.float32) + b1_ref[...],
        0.0)                                                        # (Cr, 2*bt)
    z = jnp.dot(w2_ref[...], z, preferred_element_type=jnp.float32) + b2_ref[...]
    ca = _sigmoid(z[:, :bt] + z[:, bt:])                            # (Cout, bt)
    x_ca = jnp.concatenate(
        [h[:, b * HW:(b + 1) * HW] * ca[:, b:b + 1] for b in range(bt)],
        axis=1)                                                     # (Cout, L)

    # ---- Spatial attention: 7x7 conv on (max, mean) channel pools via a
    #      separable 7+7 shift stack and one matmul with the 98 taps.
    pool = jnp.concatenate(
        [jnp.max(x_ca, axis=0, keepdims=True),
         jnp.sum(x_ca, axis=0, keepdims=True) * inv_c], axis=0)     # (2, L)
    prows = jnp.concatenate(
        [shift(pool, (r - 3) * W) * rmask_ref[r:r + 1, :] for r in range(7)],
        axis=0)                                                     # (14, L)
    spanel = jnp.concatenate(
        [shift(prows, c - 3) * cmask_ref[c:c + 1, :] for c in range(7)],
        axis=0)                                                     # (98, L)
    s = jnp.dot(wsp_ref[...], spanel,
                preferred_element_type=jnp.float32)[0:1, :]         # (1, L)
    satt = _sigmoid(s)

    o_ref[...] = (x_ca * satt).astype(o_ref.dtype)


def cnn_cbam_forward(x, wcnn, bcnn, gamma, beta, run_mean, run_var,
                     w1, b1, w2, b2, wsp, *, eps=1e-5):
    """CNNCBAM forward (eval-mode BN). x: (B, Cin, H, W) f32 -> (B, Cout, H, W)."""
    B, Cin, H, W = x.shape
    Cout = wcnn.shape[0]
    Cr = w1.shape[0]
    HW = H * W

    # Fold eval-mode BatchNorm into the conv weights / bias.
    scale = gamma * lax.rsqrt(run_var + eps)                        # (Cout,)
    w_f = wcnn * scale[:, None, None, None]                         # (Cout,Cin,3,3)
    b_f = (bcnn - run_mean) * scale + beta                          # (Cout,)
    # Im2col panel rows are ordered (kx, ky, cin) -> weight columns must match.
    wconv = jnp.transpose(w_f, (0, 3, 2, 1)).reshape(Cout, 9 * Cin)
    # Spatial taps ordered (kx, ky, ch), ch = (max, mean); pad M to 8 sublanes.
    wsp_row = jnp.transpose(wsp[0], (2, 1, 0)).reshape(1, 98)
    wsp_pad = jnp.pad(wsp_row, ((0, 7), (0, 0)))                    # (8, 98)

    # Images per grid step: VMEM-derived, keep >= 2 parallel steps (megacore),
    # pad odd batches instead of degrading bt.
    bytes_per_img = (2 * (Cin + Cout) + 9 * Cin + 98 + 16) * HW * 4
    bt = max(1, min(B, (4 << 20) // max(1, bytes_per_img)))
    if B >= 2:
        bt = min(bt, math.ceil(B / 2))
    if HW % 128 != 0:
        bt = B   # lane blocks must be 128-aligned unless the block spans the array
    B_pad = math.ceil(B / bt) * bt
    L = bt * HW

    # NCHW -> lane-concatenated (Cin, B_pad*HW); each image owns HW lanes.
    x_flat = jnp.transpose(x, (1, 0, 2, 3)).reshape(Cin, B * HW)
    if B_pad != B:
        x_flat = jnp.pad(x_flat, ((0, 0), (0, (B_pad - B) * HW)))

    # Border-validity masks for offsets -3..3, tiled over the bt lane-images.
    j = jnp.arange(HW, dtype=jnp.int32)
    offs = jnp.arange(-3, 4, dtype=jnp.int32)[:, None]
    rmask = jnp.tile((((j // W)[None] + offs >= 0) & ((j // W)[None] + offs < H))
                     .astype(jnp.float32), (1, bt))                 # (7, L)
    cmask = jnp.tile((((j % W)[None] + offs >= 0) & ((j % W)[None] + offs < W))
                     .astype(jnp.float32), (1, bt))                 # (7, L)

    kernel = functools.partial(_cnn_cbam_kernel, H=H, W=W, bt=bt)
    flops = B_pad * HW * (2 * Cout * 9 * Cin + 2 * 98 + 6 * Cout)
    cost = pl.CostEstimate(
        flops=int(flops),
        transcendentals=int(B_pad * (HW + 2 * Cout)),
        bytes_accessed=int(4 * (B_pad * (Cin + Cout) * HW
                                + Cout * 9 * Cin + 8 * 98 + 28 * L)))

    out = pl.pallas_call(
        kernel,
        out_shape=jax.ShapeDtypeStruct((Cout, B_pad * HW), x.dtype),
        grid_spec=pltpu.PrefetchScalarGridSpec(
            num_scalar_prefetch=0,
            grid=(B_pad // bt,),
            in_specs=[
                pl.BlockSpec((Cin, L), lambda g: (0, g)),           # x (lane tiled)
                pl.BlockSpec((Cout, 9 * Cin), lambda g: (0, 0)),    # folded conv W
                pl.BlockSpec((Cout, 1), lambda g: (0, 0)),          # folded conv b
                pl.BlockSpec((Cr, Cout), lambda g: (0, 0)),         # MLP w1
                pl.BlockSpec((Cr, 1), lambda g: (0, 0)),            # MLP b1
                pl.BlockSpec((Cout, Cr), lambda g: (0, 0)),         # MLP w2
                pl.BlockSpec((Cout, 1), lambda g: (0, 0)),          # MLP b2
                pl.BlockSpec((8, 98), lambda g: (0, 0)),            # 7x7 taps
                pl.BlockSpec((7, L), lambda g: (0, 0)),             # row masks
                pl.BlockSpec((7, L), lambda g: (0, 0)),             # col masks
            ],
            out_specs=pl.BlockSpec((Cout, L), lambda g: (0, g)),
        ),
        compiler_params=pltpu.CompilerParams(
            dimension_semantics=("parallel",),
            vmem_limit_bytes=32 << 20),
        cost_estimate=cost,
    )(x_flat, wconv, b_f.reshape(Cout, 1), w1, b1.reshape(Cr, 1),
      w2, b2.reshape(Cout, 1), wsp_pad, rmask, cmask)

    out = out.reshape(Cout, B_pad, H, W)[:, :B]
    return jnp.transpose(out, (1, 0, 2, 3))


def cnn_cbam_reference(x, wcnn, bcnn, gamma, beta, run_mean, run_var,
                       w1, b1, w2, b2, wsp, *, eps=1e-5):
    """Pure-JAX reference mirroring the PyTorch module (eval-mode BN)."""
    y = lax.conv_general_dilated(
        x, wcnn, window_strides=(1, 1), padding=((1, 1), (1, 1)),
        dimension_numbers=("NCHW", "OIHW", "NCHW"),
        precision=lax.Precision.HIGHEST) + bcnn[None, :, None, None]
    y = ((y - run_mean[None, :, None, None])
         * (gamma * lax.rsqrt(run_var + eps))[None, :, None, None]
         + beta[None, :, None, None])
    y = jnp.maximum(y, 0.0)

    pmax = jnp.max(y, axis=(2, 3))
    pavg = jnp.mean(y, axis=(2, 3))

    def mlp(p):
        return jax.nn.relu(p @ w1.T + b1) @ w2.T + b2

    ca = jax.nn.sigmoid(mlp(pmax) + mlp(pavg))                      # (B, C)
    y = y * ca[:, :, None, None]

    cmax = jnp.max(y, axis=1, keepdims=True)
    cavg = jnp.mean(y, axis=1, keepdims=True)
    pool = jnp.concatenate([cmax, cavg], axis=1)                    # (B, 2, H, W)
    satt = jax.nn.sigmoid(lax.conv_general_dilated(
        pool, wsp, window_strides=(1, 1), padding=((3, 3), (3, 3)),
        dimension_numbers=("NCHW", "OIHW", "NCHW"),
        precision=lax.Precision.HIGHEST))
    return y * satt


if __name__ == "__main__":
    B, Cin, Cout, H, W = 2, 4, 16, 16, 16
    Cr = Cout // 8

    key = jax.random.PRNGKey(0)
    keys = jax.random.split(key, 12)
    x = jax.random.normal(keys[0], (B, Cin, H, W), jnp.float32)
    # Convblock: Conv2d(Cin, Cout, 3, padding=1) + BatchNorm2d(Cout) (eval stats)
    wcnn = jax.random.normal(keys[1], (Cout, Cin, 3, 3), jnp.float32) * 0.2
    bcnn = jax.random.normal(keys[2], (Cout,), jnp.float32) * 0.1
    gamma = 1.0 + 0.1 * jax.random.normal(keys[3], (Cout,), jnp.float32)
    beta = 0.1 * jax.random.normal(keys[4], (Cout,), jnp.float32)
    run_mean = 0.1 * jax.random.normal(keys[5], (Cout,), jnp.float32)
    run_var = jnp.abs(1.0 + 0.1 * jax.random.normal(keys[6], (Cout,), jnp.float32))
    # ChannelAttention shared MLP: Conv2d(Cout, Cout//8, 1) and Conv2d(Cout//8, Cout, 1)
    w1 = jax.random.normal(keys[7], (Cr, Cout), jnp.float32) * 0.25
    b1 = jax.random.normal(keys[8], (Cr,), jnp.float32) * 0.1
    w2 = jax.random.normal(keys[9], (Cout, Cr), jnp.float32) * 0.5
    b2 = jax.random.normal(keys[10], (Cout,), jnp.float32) * 0.1
    # Spatial attention: Conv2d(2, 1, kernel_size=7, padding=3, bias=False)
    wsp = jax.random.normal(keys[11], (1, 2, 7, 7), jnp.float32) * 0.1

    out = jax.block_until_ready(jax.jit(cnn_cbam_forward)(
        x, wcnn, bcnn, gamma, beta, run_mean, run_var, w1, b1, w2, b2, wsp))
    ref = jax.block_until_ready(cnn_cbam_reference(
        x, wcnn, bcnn, gamma, beta, run_mean, run_var, w1, b1, w2, b2, wsp))

    assert out.shape == (B, Cout, H, W) and out.dtype == x.dtype
    max_err = float(jnp.max(jnp.abs(out - ref)))
    if max_err > 2e-3:
        raise AssertionError(f"Pallas CNNCBAM mismatch vs reference: max abs err = {max_err}")
    print("KERNEL_OK")
</pallas_src>

<mosaic_0001>
module attributes {stable_mosaic.version = 11 : i64} {
  func.func @_cnn_cbam_kernel(%arg0: i32, %arg1: memref<4x256xf32, #tpu.memory_space<vmem>>, %arg2: memref<16x36xf32, #tpu.memory_space<vmem>>, %arg3: memref<16x1xf32, #tpu.memory_space<vmem>>, %arg4: memref<2x16xf32, #tpu.memory_space<vmem>>, %arg5: memref<2x1xf32, #tpu.memory_space<vmem>>, %arg6: memref<16x2xf32, #tpu.memory_space<vmem>>, %arg7: memref<16x1xf32, #tpu.memory_space<vmem>>, %arg8: memref<8x98xf32, #tpu.memory_space<vmem>>, %arg9: memref<7x256xf32, #tpu.memory_space<vmem>>, %arg10: memref<7x256xf32, #tpu.memory_space<vmem>>, %arg11: memref<16x256xf32, #tpu.memory_space<vmem>>) attributes {dimension_semantics = [#tpu.dimension_semantics<parallel>], iteration_bounds = array<i64: 2>, scalar_prefetch = 0 : i64, scratch_operands = 0 : i64, tpu.core_type = #tpu.core_type<tc>, window_params = [{transform_indices = @transform_0, window_bounds = array<i64: 4, 256>}, {pipeline_mode = #tpu.pipeline_mode<synchronous>, transform_indices = @transform_1, window_bounds = array<i64: 16, 36>}, {pipeline_mode = #tpu.pipeline_mode<synchronous>, transform_indices = @transform_2, window_bounds = array<i64: 16, 1>}, {pipeline_mode = #tpu.pipeline_mode<synchronous>, transform_indices = @transform_3, window_bounds = array<i64: 2, 16>}, {pipeline_mode = #tpu.pipeline_mode<synchronous>, transform_indices = @transform_4, window_bounds = array<i64: 2, 1>}, {pipeline_mode = #tpu.pipeline_mode<synchronous>, transform_indices = @transform_5, window_bounds = array<i64: 16, 2>}, {pipeline_mode = #tpu.pipeline_mode<synchronous>, transform_indices = @transform_6, window_bounds = array<i64: 16, 1>}, {pipeline_mode = #tpu.pipeline_mode<synchronous>, transform_indices = @transform_7, window_bounds = array<i64: 8, 98>}, {pipeline_mode = #tpu.pipeline_mode<synchronous>, transform_indices = @transform_8, window_bounds = array<i64: 7, 256>}, {pipeline_mode = #tpu.pipeline_mode<synchronous>, transform_indices = @transform_9, window_bounds = array<i64: 7, 256>}, {transform_indices = @transform_10, window_bounds = array<i64: 16, 256>}]} {
    %c0 = arith.constant 0 : index
    %c0_0 = arith.constant 0 : index
    %0 = vector.load %arg1[%c0, %c0_0] : memref<4x256xf32, #tpu.memory_space<vmem>>, vector<4x256xf32>
    %c16_i32 = arith.constant 16 : i32
    %1 = tpu.dynamic_rotate %0 by %c16_i32 dim 1 : vector<4x256xf32>, i32 -> vector<4x256xf32>
    %c2 = arith.constant 2 : index
    %c0_1 = arith.constant 0 : index
    %2 = vector.load %arg9[%c2, %c0_1] : memref<7x256xf32, #tpu.memory_space<vmem>>, vector<1x256xf32>
    %3 = vector.broadcast %2 : vector<1x256xf32> to vector<4x256xf32>
    %4 = arith.mulf %1, %3 : vector<4x256xf32>
    %c3 = arith.constant 3 : index
    %c0_2 = arith.constant 0 : index
    %5 = vector.load %arg9[%c3, %c0_2] : memref<7x256xf32, #tpu.memory_space<vmem>>, vector<1x256xf32>
    %6 = vector.broadcast %5 : vector<1x256xf32> to vector<4x256xf32>
    %7 = arith.mulf %0, %6 : vector<4x256xf32>
    %c240_i32 = arith.constant 240 : i32
    %8 = tpu.dynamic_rotate %0 by %c240_i32 dim 1 : vector<4x256xf32>, i32 -> vector<4x256xf32>
    %c4 = arith.constant 4 : index
    %c0_3 = arith.constant 0 : index
    %9 = vector.load %arg9[%c4, %c0_3] : memref<7x256xf32, #tpu.memory_space<vmem>>, vector<1x256xf32>
    %10 = vector.broadcast %9 : vector<1x256xf32> to vector<4x256xf32>
    %11 = arith.mulf %8, %10 : vector<4x256xf32>
    %12 = tpu.concatenate %4, %7, %11 in 0 : vector<4x256xf32>, vector<4x256xf32>, vector<4x256xf32> -> vector<12x256xf32>
    %c1_i32 = arith.constant 1 : i32
    %13 = tpu.dynamic_rotate %12 by %c1_i32 dim 1 : vector<12x256xf32>, i32 -> vector<12x256xf32>
    %c2_4 = arith.constant 2 : index
    %c0_5 = arith.constant 0 : index
    %14 = vector.load %arg10[%c2_4, %c0_5] : memref<7x256xf32, #tpu.memory_space<vmem>>, vector<1x256xf32>
    %15 = vector.broadcast %14 : vector<1x256xf32> to vector<12x256xf32>
    %16 = arith.mulf %13, %15 : vector<12x256xf32>
    %c3_6 = arith.constant 3 : index
    %c0_7 = arith.constant 0 : index
    %17 = vector.load %arg10[%c3_6, %c0_7] : memref<7x256xf32, #tpu.memory_space<vmem>>, vector<1x256xf32>
    %18 = vector.broadcast %17 : vector<1x256xf32> to vector<12x256xf32>
    %19 = arith.mulf %12, %18 : vector<12x256xf32>
    %c255_i32 = arith.constant 255 : i32
    %20 = tpu.dynamic_rotate %12 by %c255_i32 dim 1 : vector<12x256xf32>, i32 -> vector<12x256xf32>
    %c4_8 = arith.constant 4 : index
    %c0_9 = arith.constant 0 : index
    %21 = vector.load %arg10[%c4_8, %c0_9] : memref<7x256xf32, #tpu.memory_space<vmem>>, vector<1x256xf32>
    %22 = vector.broadcast %21 : vector<1x256xf32> to vector<12x256xf32>
    %23 = arith.mulf %20, %22 : vector<12x256xf32>
    %24 = tpu.concatenate %16, %19, %23 in 0 : vector<12x256xf32>, vector<12x256xf32>, vector<12x256xf32> -> vector<36x256xf32>
    %c0_10 = arith.constant 0 : index
    %c0_11 = arith.constant 0 : index
    %25 = vector.load %arg2[%c0_10, %c0_11] : memref<16x36xf32, #tpu.memory_space<vmem>>, vector<16x36xf32>
    %cst = arith.constant dense<0.000000e+00> : vector<16x256xf32>
    %26 = tpu.matmul %25, %24, %cst {dimension_numbers = #tpu.dot_dimension_numbers<[1], [0], [0], [1], [0, 0, 1, 1], [], []>} : vector<16x36xf32>, vector<36x256xf32>, vector<16x256xf32> -> vector<16x256xf32>
    %c0_12 = arith.constant 0 : index
    %c0_13 = arith.constant 0 : index
    %27 = vector.load %arg3[%c0_12, %c0_13] : memref<16x1xf32, #tpu.memory_space<vmem>>, vector<16x1xf32>
    %28 = vector.broadcast %27 : vector<16x1xf32> to vector<16x256xf32>
    %29 = arith.addf %26, %28 : vector<16x256xf32>
    %cst_14 = arith.constant 0.000000e+00 : f32
    %30 = vector.broadcast %cst_14 : f32 to vector<16x256xf32>
    %31 = arith.maximumf %29, %30 : vector<16x256xf32>
    %cst_15 = arith.constant dense<0xFF800000> : vector<16xf32>
    %32 = vector.multi_reduction <maximumf>, %31, %cst_15 [1] : vector<16x256xf32> to vector<16xf32>
    %33 = vector.shape_cast %32 : vector<16xf32> to vector<16x1xf32>
    %cst_16 = arith.constant dense<0.000000e+00> : vector<16xf32>
    %34 = vector.multi_reduction <add>, %31, %cst_16 [1] : vector<16x256xf32> to vector<16xf32>
    %35 = vector.shape_cast %34 : vector<16xf32> to vector<16x1xf32>
    %cst_17 = arith.constant 3.906250e-03 : f32
    %36 = vector.broadcast %cst_17 : f32 to vector<16x1xf32>
    %37 = arith.mulf %35, %36 : vector<16x1xf32>
    %38 = tpu.concatenate %33, %37 in 1 : vector<16x1xf32>, vector<16x1xf32> -> vector<16x2xf32>
    %c0_18 = arith.constant 0 : index
    %c0_19 = arith.constant 0 : index
    %39 = vector.load %arg4[%c0_18, %c0_19] : memref<2x16xf32, #tpu.memory_space<vmem>>, vector<2x16xf32>
    %cst_20 = arith.constant dense<0.000000e+00> : vector<2x2xf32>
    %40 = tpu.matmul %39, %38, %cst_20 {dimension_numbers = #tpu.dot_dimension_numbers<[1], [0], [0], [1], [0, 0, 1, 1], [], []>} : vector<2x16xf32>, vector<16x2xf32>, vector<2x2xf32> -> vector<2x2xf32>
    %c0_21 = arith.constant 0 : index
    %c0_22 = arith.constant 0 : index
    %41 = vector.load %arg5[%c0_21, %c0_22] : memref<2x1xf32, #tpu.memory_space<vmem>>, vector<2x1xf32>
    %42 = vector.broadcast %41 : vector<2x1xf32> to vector<2x2xf32>
    %43 = arith.addf %40, %42 : vector<2x2xf32>
    %cst_23 = arith.constant 0.000000e+00 : f32
    %44 = vector.broadcast %cst_23 : f32 to vector<2x2xf32>
    %45 = arith.maximumf %43, %44 : vector<2x2xf32>
    %c0_24 = arith.constant 0 : index
    %c0_25 = arith.constant 0 : index
    %46 = vector.load %arg6[%c0_24, %c0_25] : memref<16x2xf32, #tpu.memory_space<vmem>>, vector<16x2xf32>
    %cst_26 = arith.constant dense<0.000000e+00> : vector<16x2xf32>
    %47 = tpu.matmul %46, %45, %cst_26 {dimension_numbers = #tpu.dot_dimension_numbers<[1], [0], [0], [1], [0, 0, 1, 1], [], []>} : vector<16x2xf32>, vector<2x2xf32>, vector<16x2xf32> -> vector<16x2xf32>
    %c0_27 = arith.constant 0 : index
    %c0_28 = arith.constant 0 : index
    %48 = vector.load %arg7[%c0_27, %c0_28] : memref<16x1xf32, #tpu.memory_space<vmem>>, vector<16x1xf32>
    %49 = vector.broadcast %48 : vector<16x1xf32> to vector<16x2xf32>
    %50 = arith.addf %47, %49 : vector<16x2xf32>
    %51 = vector.extract_strided_slice %50 {offsets = [0, 0], sizes = [16, 1], strides = [1, 1]} : vector<16x2xf32> to vector<16x1xf32>
    %52 = vector.extract_strided_slice %50 {offsets = [0, 1], sizes = [16, 1], strides = [1, 1]} : vector<16x2xf32> to vector<16x1xf32>
    %53 = arith.addf %51, %52 : vector<16x1xf32>
    %cst_29 = arith.constant 0.000000e+00 : f32
    %54 = vector.broadcast %cst_29 : f32 to vector<16x1xf32>
    %55 = arith.subf %54, %53 : vector<16x1xf32>
    %56 = math.exp %55 : vector<16x1xf32>
    %cst_30 = arith.constant 1.000000e+00 : f32
    %57 = vector.broadcast %cst_30 : f32 to vector<16x1xf32>
    %58 = arith.addf %57, %56 : vector<16x1xf32>
    %cst_31 = arith.constant 1.000000e+00 : f32
    %59 = vector.broadcast %cst_31 : f32 to vector<16x1xf32>
    %60 = arith.divf %59, %58 : vector<16x1xf32>
    %61 = vector.broadcast %60 : vector<16x1xf32> to vector<16x256xf32>
    %62 = arith.mulf %31, %61 : vector<16x256xf32>
    %cst_32 = arith.constant dense<0xFF800000> : vector<256xf32>
    %63 = vector.multi_reduction <maximumf>, %62, %cst_32 [0] : vector<16x256xf32> to vector<256xf32>
    %64 = vector.shape_cast %63 : vector<256xf32> to vector<1x256xf32>
    %cst_33 = arith.constant dense<0.000000e+00> : vector<256xf32>
    %65 = vector.multi_reduction <add>, %62, %cst_33 [0] : vector<16x256xf32> to vector<256xf32>
    %66 = vector.shape_cast %65 : vector<256xf32> to vector<1x256xf32>
    %cst_34 = arith.constant 6.250000e-02 : f32
    %67 = vector.broadcast %cst_34 : f32 to vector<1x256xf32>
    %68 = arith.mulf %66, %67 : vector<1x256xf32>
    %69 = tpu.concatenate %64, %68 in 0 : vector<1x256xf32>, vector<1x256xf32> -> vector<2x256xf32>
    %c48_i32 = arith.constant 48 : i32
    %70 = tpu.dynamic_rotate %69 by %c48_i32 dim 1 : vector<2x256xf32>, i32 -> vector<2x256xf32>
    %c0_35 = arith.constant 0 : index
    %c0_36 = arith.constant 0 : index
    %71 = vector.load %arg9[%c0_35, %c0_36] : memref<7x256xf32, #tpu.memory_space<vmem>>, vector<1x256xf32>
    %72 = vector.broadcast %71 : vector<1x256xf32> to vector<2x256xf32>
    %73 = arith.mulf %70, %72 : vector<2x256xf32>
    %c32_i32 = arith.constant 32 : i32
    %74 = tpu.dynamic_rotate %69 by %c32_i32 dim 1 : vector<2x256xf32>, i32 -> vector<2x256xf32>
    %c1 = arith.constant 1 : index
    %c0_37 = arith.constant 0 : index
    %75 = vector.load %arg9[%c1, %c0_37] : memref<7x256xf32, #tpu.memory_space<vmem>>, vector<1x256xf32>
    %76 = vector.broadcast %75 : vector<1x256xf32> to vector<2x256xf32>
    %77 = arith.mulf %74, %76 : vector<2x256xf32>
    %c16_i32_38 = arith.constant 16 : i32
    %78 = tpu.dynamic_rotate %69 by %c16_i32_38 dim 1 : vector<2x256xf32>, i32 -> vector<2x256xf32>
    %c2_39 = arith.constant 2 : index
    %c0_40 = arith.constant 0 : index
    %79 = vector.load %arg9[%c2_39, %c0_40] : memref<7x256xf32, #tpu.memory_space<vmem>>, vector<1x256xf32>
    %80 = vector.broadcast %79 : vector<1x256xf32> to vector<2x256xf32>
    %81 = arith.mulf %78, %80 : vector<2x256xf32>
    %c3_41 = arith.constant 3 : index
    %c0_42 = arith.constant 0 : index
    %82 = vector.load %arg9[%c3_41, %c0_42] : memref<7x256xf32, #tpu.memory_space<vmem>>, vector<1x256xf32>
    %83 = vector.broadcast %82 : vector<1x256xf32> to vector<2x256xf32>
    %84 = arith.mulf %69, %83 : vector<2x256xf32>
    %c240_i32_43 = arith.constant 240 : i32
    %85 = tpu.dynamic_rotate %69 by %c240_i32_43 dim 1 : vector<2x256xf32>, i32 -> vector<2x256xf32>
    %c4_44 = arith.constant 4 : index
    %c0_45 = arith.constant 0 : index
    %86 = vector.load %arg9[%c4_44, %c0_45] : memref<7x256xf32, #tpu.memory_space<vmem>>, vector<1x256xf32>
    %87 = vector.broadcast %86 : vector<1x256xf32> to vector<2x256xf32>
    %88 = arith.mulf %85, %87 : vector<2x256xf32>
    %c224_i32 = arith.constant 224 : i32
    %89 = tpu.dynamic_rotate %69 by %c224_i32 dim 1 : vector<2x256xf32>, i32 -> vector<2x256xf32>
    %c5 = arith.constant 5 : index
    %c0_46 = arith.constant 0 : index
    %90 = vector.load %arg9[%c5, %c0_46] : memref<7x256xf32, #tpu.memory_space<vmem>>, vector<1x256xf32>
    %91 = vector.broadcast %90 : vector<1x256xf32> to vector<2x256xf32>
    %92 = arith.mulf %89, %91 : vector<2x256xf32>
    %c208_i32 = arith.constant 208 : i32
    %93 = tpu.dynamic_rotate %69 by %c208_i32 dim 1 : vector<2x256xf32>, i32 -> vector<2x256xf32>
    %c6 = arith.constant 6 : index
    %c0_47 = arith.constant 0 : index
    %94 = vector.load %arg9[%c6, %c0_47] : memref<7x256xf32, #tpu.memory_space<vmem>>, vector<1x256xf32>
    %95 = vector.broadcast %94 : vector<1x256xf32> to vector<2x256xf32>
    %96 = arith.mulf %93, %95 : vector<2x256xf32>
    %97 = tpu.concatenate %73, %77, %81, %84, %88, %92, %96 in 0 : vector<2x256xf32>, vector<2x256xf32>, vector<2x256xf32>, vector<2x256xf32>, vector<2x256xf32>, vector<2x256xf32>, vector<2x256xf32> -> vector<14x256xf32>
    %c3_i32 = arith.constant 3 : i32
    %98 = tpu.dynamic_rotate %97 by %c3_i32 dim 1 : vector<14x256xf32>, i32 -> vector<14x256xf32>
    %c0_48 = arith.constant 0 : index
    %c0_49 = arith.constant 0 : index
    %99 = vector.load %arg10[%c0_48, %c0_49] : memref<7x256xf32, #tpu.memory_space<vmem>>, vector<1x256xf32>
    %100 = vector.broadcast %99 : vector<1x256xf32> to vector<14x256xf32>
    %101 = arith.mulf %98, %100 : vector<14x256xf32>
    %c2_i32 = arith.constant 2 : i32
    %102 = tpu.dynamic_rotate %97 by %c2_i32 dim 1 : vector<14x256xf32>, i32 -> vector<14x256xf32>
    %c1_50 = arith.constant 1 : index
    %c0_51 = arith.constant 0 : index
    %103 = vector.load %arg10[%c1_50, %c0_51] : memref<7x256xf32, #tpu.memory_space<vmem>>, vector<1x256xf32>
    %104 = vector.broadcast %103 : vector<1x256xf32> to vector<14x256xf32>
    %105 = arith.mulf %102, %104 : vector<14x256xf32>
    %c1_i32_52 = arith.constant 1 : i32
    %106 = tpu.dynamic_rotate %97 by %c1_i32_52 dim 1 : vector<14x256xf32>, i32 -> vector<14x256xf32>
    %c2_53 = arith.constant 2 : index
    %c0_54 = arith.constant 0 : index
    %107 = vector.load %arg10[%c2_53, %c0_54] : memref<7x256xf32, #tpu.memory_space<vmem>>, vector<1x256xf32>
    %108 = vector.broadcast %107 : vector<1x256xf32> to vector<14x256xf32>
    %109 = arith.mulf %106, %108 : vector<14x256xf32>
    %c3_55 = arith.constant 3 : index
    %c0_56 = arith.constant 0 : index
    %110 = vector.load %arg10[%c3_55, %c0_56] : memref<7x256xf32, #tpu.memory_space<vmem>>, vector<1x256xf32>
    %111 = vector.broadcast %110 : vector<1x256xf32> to vector<14x256xf32>
    %112 = arith.mulf %97, %111 : vector<14x256xf32>
    %c255_i32_57 = arith.constant 255 : i32
    %113 = tpu.dynamic_rotate %97 by %c255_i32_57 dim 1 : vector<14x256xf32>, i32 -> vector<14x256xf32>
    %c4_58 = arith.constant 4 : index
    %c0_59 = arith.constant 0 : index
    %114 = vector.load %arg10[%c4_58, %c0_59] : memref<7x256xf32, #tpu.memory_space<vmem>>, vector<1x256xf32>
    %115 = vector.broadcast %114 : vector<1x256xf32> to vector<14x256xf32>
    %116 = arith.mulf %113, %115 : vector<14x256xf32>
    %c254_i32 = arith.constant 254 : i32
    %117 = tpu.dynamic_rotate %97 by %c254_i32 dim 1 : vector<14x256xf32>, i32 -> vector<14x256xf32>
    %c5_60 = arith.constant 5 : index
    %c0_61 = arith.constant 0 : index
    %118 = vector.load %arg10[%c5_60, %c0_61] : memref<7x256xf32, #tpu.memory_space<vmem>>, vector<1x256xf32>
    %119 = vector.broadcast %118 : vector<1x256xf32> to vector<14x256xf32>
    %120 = arith.mulf %117, %119 : vector<14x256xf32>
    %c253_i32 = arith.constant 253 : i32
    %121 = tpu.dynamic_rotate %97 by %c253_i32 dim 1 : vector<14x256xf32>, i32 -> vector<14x256xf32>
    %c6_62 = arith.constant 6 : index
    %c0_63 = arith.constant 0 : index
    %122 = vector.load %arg10[%c6_62, %c0_63] : memref<7x256xf32, #tpu.memory_space<vmem>>, vector<1x256xf32>
    %123 = vector.broadcast %122 : vector<1x256xf32> to vector<14x256xf32>
    %124 = arith.mulf %121, %123 : vector<14x256xf32>
    %125 = tpu.concatenate %101, %105, %109, %112, %116, %120, %124 in 0 : vector<14x256xf32>, vector<14x256xf32>, vector<14x256xf32>, vector<14x256xf32>, vector<14x256xf32>, vector<14x256xf32>, vector<14x256xf32> -> vector<98x256xf32>
    %c0_64 = arith.constant 0 : index
    %c0_65 = arith.constant 0 : index
    %126 = vector.load %arg8[%c0_64, %c0_65] : memref<8x98xf32, #tpu.memory_space<vmem>>, vector<8x98xf32>
    %cst_66 = arith.constant dense<0.000000e+00> : vector<8x256xf32>
    %127 = tpu.matmul %126, %125, %cst_66 {dimension_numbers = #tpu.dot_dimension_numbers<[1], [0], [0], [1], [0, 0, 1, 1], [], []>} : vector<8x98xf32>, vector<98x256xf32>, vector<8x256xf32> -> vector<8x256xf32>
    %128 = vector.extract_strided_slice %127 {offsets = [0, 0], sizes = [1, 256], strides = [1, 1]} : vector<8x256xf32> to vector<1x256xf32>
    %cst_67 = arith.constant 0.000000e+00 : f32
    %129 = vector.broadcast %cst_67 : f32 to vector<1x256xf32>
    %130 = arith.subf %129, %128 : vector<1x256xf32>
    %131 = math.exp %130 : vector<1x256xf32>
    %cst_68 = arith.constant 1.000000e+00 : f32
    %132 = vector.broadcast %cst_68 : f32 to vector<1x256xf32>
    %133 = arith.addf %132, %131 : vector<1x256xf32>
    %cst_69 = arith.constant 1.000000e+00 : f32
    %134 = vector.broadcast %cst_69 : f32 to vector<1x256xf32>
    %135 = arith.divf %134, %133 : vector<1x256xf32>
    %136 = vector.broadcast %135 : vector<1x256xf32> to vector<16x256xf32>
    %137 = arith.mulf %62, %136 : vector<16x256xf32>
    %c0_70 = arith.constant 0 : index
    %c0_71 = arith.constant 0 : index
    %138 = vector.load %arg11[%c0_70, %c0_71] : memref<16x256xf32, #tpu.memory_space<vmem>>, vector<16x256xf32>
    tpu.vector_store %arg11[%c0_70, %c0_71], %137 {strides = array<i32>} : memref<16x256xf32, #tpu.memory_space<vmem>>, vector<16x256xf32>,
    return
  }
  func.func @transform_0(%arg0: i32) -> (i32, i32) {
    %c0_i32 = arith.constant 0 : i32
    %c0_i32_0 = arith.constant 0 : i32
    return %c0_i32, %arg0 : i32, i32
  }
  func.func @transform_1(%arg0: i32) -> (i32, i32) {
    %c0_i32 = arith.constant 0 : i32
    %c0_i32_0 = arith.constant 0 : i32
    %c0_i32_1 = arith.constant 0 : i32
    return %c0_i32, %c0_i32_0 : i32, i32
  }
  func.func @transform_2(%arg0: i32) -> (i32, i32) {
    %c0_i32 = arith.constant 0 : i32
    %c0_i32_0 = arith.constant 0 : i32
    %c0_i32_1 = arith.constant 0 : i32
    return %c0_i32, %c0_i32_0 : i32, i32
  }
  func.func @transform_3(%arg0: i32) -> (i32, i32) {
    %c0_i32 = arith.constant 0 : i32
    %c0_i32_0 = arith.constant 0 : i32
    %c0_i32_1 = arith.constant 0 : i32
    return %c0_i32, %c0_i32_0 : i32, i32
  }
  func.func @transform_4(%arg0: i32) -> (i32, i32) {
    %c0_i32 = arith.constant 0 : i32
    %c0_i32_0 = arith.constant 0 : i32
    %c0_i32_1 = arith.constant 0 : i32
    return %c0_i32, %c0_i32_0 : i32, i32
  }
  func.func @transform_5(%arg0: i32) -> (i32, i32) {
    %c0_i32 = arith.constant 0 : i32
    %c0_i32_0 = arith.constant 0 : i32
    %c0_i32_1 = arith.constant 0 : i32
    return %c0_i32, %c0_i32_0 : i32, i32
  }
  func.func @transform_6(%arg0: i32) -> (i32, i32) {
    %c0_i32 = arith.constant 0 : i32
    %c0_i32_0 = arith.constant 0 : i32
    %c0_i32_1 = arith.constant 0 : i32
    return %c0_i32, %c0_i32_0 : i32, i32
  }
  func.func @transform_7(%arg0: i32) -> (i32, i32) {
    %c0_i32 = arith.constant 0 : i32
    %c0_i32_0 = arith.constant 0 : i32
    %c0_i32_1 = arith.constant 0 : i32
    return %c0_i32, %c0_i32_0 : i32, i32
  }
  func.func @transform_8(%arg0: i32) -> (i32, i32) {
    %c0_i32 = arith.constant 0 : i32
    %c0_i32_0 = arith.constant 0 : i32
    %c0_i32_1 = arith.constant 0 : i32
    return %c0_i32, %c0_i32_0 : i32, i32
  }
  func.func @transform_9(%arg0: i32) -> (i32, i32) {
    %c0_i32 = arith.constant 0 : i32
    %c0_i32_0 = arith.constant 0 : i32
    %c0_i32_1 = arith.constant 0 : i32
    return %c0_i32, %c0_i32_0 : i32, i32
  }
  func.func @transform_10(%arg0: i32) -> (i32, i32) {
    %c0_i32 = arith.constant 0 : i32
    %c0_i32_0 = arith.constant 0 : i32
    return %c0_i32, %arg0 : i32, i32
  }
}

</mosaic_0001>

<bundles_post_ra>
// kernel: cnn_cbam_forward.1
= control target key start
LH: loop header
LB: loop body
LE: loop exit
PB: predicated region body
PF: predicated region fallthrough
CT: control target
= control target key end

     0   :  { %s1683_s13 = smov 0   ;;  %s1685_s14 = smov 0   ;;  %s2138_s0 = inlined_call_operand.vmem [shape: f32[4,512], index: 0, kind: input, shape index: {}]   ;;  %s2139_s1 = inlined_call_operand.vmem [shape: f32[16,36], index: 1, kind: input, shape index: {}]   ;;  %s2140_s2 = inlined_call_operand.vmem [shape: f32[16,1], index: 2, kind: input, shape index: {}]   ;;  %s2141_s3 = inlined_call_operand.vmem [shape: f32[2,16], index: 3, kind: input, shape index: {}]   ;;  %s2142_s4 = inlined_call_operand.vmem [shape: f32[2,1], index: 4, kind: input, shape index: {}]   ;;  %s2143_s5 = inlined_call_operand.vmem [shape: f32[16,2], index: 5, kind: input, shape index: {}]   ;;  %s2144_s6 = inlined_call_operand.vmem [shape: f32[16,1], index: 6, kind: input, shape index: {}]   ;;  %s2145_s7 = inlined_call_operand.vmem [shape: f32[8,98], index: 7, kind: input, shape index: {}]   ;;  %s2146_s8 = inlined_call_operand.vmem [shape: f32[7,256], index: 8, kind: input, shape index: {}]   ;;  %s2147_s9 = inlined_call_operand.vmem [shape: f32[7,256], index: 9, kind: input, shape index: {}]   ;;  %s2148_s10 = inlined_call_operand.vmem [shape: f32[16,512], index: 10, kind: output, shape index: {}]  }
   0x1   :  { %s1687_s15 = smov 0  }
   0x2 LB: > { %s1696_s16 = sadd.s32 4294967295, %s1611_s15   ;;  %s1698_s17 = sadd.s32 1, %s1611_s15   ;;  %s1611_s15 = sphi %s1687_s15, %s2152_s15   ;;  %s1607_s14 = sphi %s1685_s14, %s2151_s14   ;;  %s1603_s13 = sphi %s1683_s13, %s2150_s13  }
   0x3   : > { %s239_s18 = ssub.s32 %s1611_s15, %s1698_s17  ;;  %s242_s19 = sadd.s32 1, %s1607_s14 }
   0x4   : > { %p240_p0 = scmp.eq.s32.totalorder %s239_s18, 0  ;;  %p252_p1 = scmp.ne.s32.totalorder %s1607_s14, %s1603_s13 }
   0x5   : > { %p253_p2 = scmp.eq.s32.totalorder %s1696_s16, 1  ;;  %p1480_p3 = scmp.ge.s32.totalorder %s1611_s15, 1 }
   0x6   : > { %s1706_s20 = scalar_select %p240_p0, %s1607_s14, %s242_s19  }
   0x7   : > { %p1708_p4 = por %p253_p2, %p252_p1  ;;  %p313_p5 = scmp.lt.s32.totalorder %s1611_s15, 3 }
   0x9   : > { %p314_p6 = pnand %p1480_p3, %p313_p5 }
   0xa   : > { %s1482_s22 = sshll.u32 (!%p314_p6), %s1696_s16, 1  ;;  %s1613_s27 = smov (!%p314_p6), 16  }
   0xb   : > { %317 = sbr.rel (%p314_p6) target bundleno = 1861 (0x745), region = 60  ;;  %p351_p7 = scmp.lt.s32.totalorder (!%p314_p6), %s1482_s22, 3 }
   0xc   : > { %s1614_s28 = smov (!%p314_p6), 112   ;;  %s1617_s24 = smov (!%p314_p6), 1  }
   0xd   : > { %s1620_s11 = smov (!%p314_p6), 32   ;;  %s1621_s12 = smov (!%p314_p6), 96  }
   0xe   : > { %s1622_s15 = smov (!%p314_p6), 80   ;;  %s1623_s18 = smov (!%p314_p6), 48  }
  0x10   : > { %s2154_s22 = smov (!%p351_p7, %s1482_s22), 3  ;;  %v365_v2 = vlaneseq  ;;  %v1485_v6 = vld [vmem:[%s2146_s8 + $0x3] ss:$8 sm:$0x3]  ;;  %vm424_vm2 = vcmask 1043456   ;;  %v1616_v46 = vmov 0.0  }
  0x11   : > { %s1483_s23 = sshll.u32 %s2154_s22, 2  ;;  %v1484_v11 = vld [vmem:[%s2146_s8 + $0x2] ss:$8 sm:$0x3]  ;;  %611 = vmatprep.mubr.f32.mxu0 %v1616_v46  ;;  %1358 = vmatprep.mubr.f32.mxu1 %v1616_v46  ;;  %v1618_v47 = vmov 0   ;;  %vm534_vm5 = vcmask 293888  }
  0x12   : > { %s354_s26 = scalar_lea.vmem %s2138_s0, %s1483_s23  ;;  %v374_v3 = vshrl.u32 %v365_v2, 7  ;;  %v1735_v10 = vand.u32 127, %v365_v2  ;;  %v1486_v12 = vld [vmem:[%s2146_s8 + $0x4] ss:$8 sm:$0x3]  ;;  %s1615_s23 = smov 127   ;;  %1571 = vset.pattern.permute.xlu1 %v1618_v47  ;;  %1570 = vset.pattern.permute.xlu0 %v1618_v47 }
  0x13   : > { %v357_v0 = vld [vmem:[%s354_s26] sm:$0xff]  ;;  %v523_v49 = vld [vmem:[%s2140_s2 + $0x8] sm:$0xff]  ;;  %vm1619_vm6 = vmmov 0   ;;  %vm642_vm7 = vcmask 7168   ;;  %vm652_vm8 = vcmask 130048   ;;  %vm741_vm9 = vcmask 15360  }
  0x14   : > { %361 = vrot.lane.b32.xlu1 %v357_v0, %s1613_s27  ;;  %399 = vrot.lane.b32.xlu0 %v357_v0, %s1614_s28  ;;  %v359_v1 = vcombine.high %v357_v0, %v357_v0  ;;  %v1720_v4 = vsub.s32 0, %v374_v3  ;;  %v1722_v5 = vsub.s32 1, %v374_v3  ;;  %vm367_vm0 = vcmp.lt.s32.totalorder %v1735_v10, 16  ;;  %v1488_v16 = vld [vmem:[%s2147_s9 + $0x3] ss:$8 sm:$0x3] }
  0x15   : > { %vm403_vm1 = vcmp.lt.s32.totalorder %v1735_v10, 112  ;;  %v522_v48 = vld [vmem:[%s2140_s2] sm:$0xff]  ;;  %vm482_vm3 = vcmp.lt.s32.totalorder %v1735_v10, 127  ;;  %vm435_vm4 = vcmp.lt.s32.totalorder %v1735_v10, 1  ;;  %vm748_vm10 = vcmask 1041408  }
  0x16   : > { %v1728_v7 = vrot.slane %v1485_v6, %v1720_v4  ;;  %v1731_v8 = vrot.slane %v1485_v6, %v1722_v5  ;;  %v1749_v17 = vrot.slane %v1484_v11, %v1720_v4  ;;  %v1752_v18 = vrot.slane %v1484_v11, %v1722_v5  ;;  %v1489_v50 = vld [vmem:[%s2147_s9 + $0x4] ss:$8 sm:$0x3]  ;;  %v1487_v59 = vld [vmem:[%s2147_s9 + $0x2] ss:$8 sm:$0x3] }
  0x17   : > { %v1755_v19 = vrot.slane %v1486_v12, %v1720_v4  ;;  %v1758_v20 = vrot.slane %v1486_v12, %v1722_v5  ;;  %v1761_v23 = vrot.slane %v1488_v16, %v1722_v5  ;;  %v1764_v25 = vrot.slane %v1488_v16, %v1720_v4 }
  0x18   : > { %363 = vrot.lane.b32.xlu1 %v359_v1, %s1613_s27  ;;  %401 = vrot.lane.b32.xlu0 %v359_v1, %s1614_s28  ;;  %v396_v9 = vcombine.low %v1728_v7, %v1731_v8  ;;  %v1807_v51 = vrot.slane %v1489_v50, %v1720_v4  ;;  %v1810_v52 = vrot.slane %v1489_v50, %v1722_v5  ;;  %v729_v50 = vld [vmem:[%s2144_s6] sm:$0xff]  ;;  %vm893_vm11 = vcmask 1040384  }
  0x19   : > { %v1831_v2 = vrot.slane %v1487_v59, %v1720_v4  ;;  %v1834_v3 = vrot.slane %v1487_v59, %v1722_v5  ;;  %vm921_vm12 = vcmp.lt.s32.totalorder %v1735_v10, 32  ;;  %vm963_vm13 = vcmp.lt.s32.totalorder %v1735_v10, 96 }
  0x1a   : > { %v398_v15 = vmul.f32 %v396_v9, %v357_v0  ;;  %vm985_vm14 = vcmp.lt.s32.totalorder %v1735_v10, 80  ;;  %vm900_vm15 = vcmp.lt.s32.totalorder %v1735_v10, 48 }
  0x1c   : > { %v422_v24 = vcombine.low %v398_v15, %v398_v15 }
  0x86   : > { %v362_v13 = vpop.permute.xlu1 %361  ;;  %v400_v14 = vpop.permute.xlu0 %399 }
  0x8a   : > { %v364_v21 = vpop.permute.xlu1 %363  ;;  %v402_v22 = vpop.permute.xlu0 %401 }
  0x8b   : > { %v368_v26 = vsel %vm367_vm0, %v362_v13, %v364_v21  ;;  %v369_v27 = vsel %vm367_vm0, %v364_v21, %v362_v13  ;;  %v404_v28 = vsel %vm403_vm1, %v400_v14, %v402_v22  ;;  %v405_v29 = vsel %vm403_vm1, %v402_v22, %v400_v14 }
  0x8c   : > { %v383_v30 = vmul.f32 %v1749_v17, %v369_v27  ;;  %v384_v31 = vmul.f32 %v1752_v18, %v368_v26  ;;  %v419_v32 = vmul.f32 %v1755_v19, %v404_v28  ;;  %v420_v33 = vmul.f32 %v1758_v20, %v405_v29  ;;  %v520_v29 = vld [vmem:[%s2139_s1] sm:$0xff] }
  0x8e   : > { %480 = vrot.lane.b32.xlu1 %v420_v33, %s1615_s23  ;;  %476 = vrot.lane.b32.xlu0 %v419_v32, %s1615_s23  ;;  %v426_v34 = vsel %vm424_vm2, %v384_v31, %v398_v15  ;;  %v425_v35 = vsel %vm424_vm2, %v383_v30, %v422_v24  ;;  %v473_v36 = vmul.f32 %v1761_v23, %v420_v33  ;;  %v521_v30 = vld [vmem:[%s2139_s1 + $0x8] sm:$0xff] }
  0x8f   : > { %v471_v37 = vmul.f32 %v1761_v23, %v426_v34  ;;  %v470_v38 = vmul.f32 %v1764_v25, %v425_v35  ;;  %v472_v39 = vmul.f32 %v1764_v25, %v419_v32 }
  0x90   : > { %v512_v40 = vrot.slane %v473_v36, 4 }
  0x91   : > { %v509_v41 = vrot.slane %v471_v37, 4  ;;  %v508_v42 = vrot.slane %v470_v38, 4  ;;  %v510_v43 = vrot.slane %v472_v39, 4 }
  0x92   : > { %478 = vrot.lane.b32.xlu1 %v426_v34, %s1615_s23  ;;  %474 = vrot.lane.b32.xlu0 %v425_v35, %s1615_s23 }
  0x93   : > { %v513_v44 = vsel %vm424_vm2, %v509_v41, %v512_v40  ;;  %v511_v45 = vsel %vm424_vm2, %v508_v42, %v510_v43 }
  0x96   : > { %433 = vrot.lane.b32.xlu1 %v420_v33, %s1617_s24  ;;  %429 = vrot.lane.b32.xlu0 %v419_v32, %s1617_s24 }
  0x9a   : > { %431 = vrot.lane.b32.xlu1 %v426_v34, %s1617_s24  ;;  %427 = vrot.lane.b32.xlu0 %v425_v35, %s1617_s24 }
  0x9e   : > { %526 = vperm.xlu1 %1571, %v522_v48   ;;  %531 = vperm.xlu0 %1570, %v523_v49  }
 0x100   : > { %v481_v53 = vpop.permute.xlu1 %480  ;;  %v477_v54 = vpop.permute.xlu0 %476 }
 0x101   : > { %v484_v55 = vsel %vm482_vm3, %v477_v54, %v481_v53  ;;  %v486_v56 = vsel %vm482_vm3, %v481_v53, %v477_v54  ;;  %v730_v53 = vld [vmem:[%s2144_s6 + $0x8] sm:$0xff]  ;;  %v646_v54 = vld [vmem:[%s2142_s4] sm:$0x3] }
 0x102   : > { %v502_v57 = vmul.f32 %v1807_v51, %v484_v55  ;;  %v503_v58 = vmul.f32 %v1810_v52, %v486_v56 }
 0x104   : > { %v479_v60 = vpop.permute.xlu1 %478  ;;  %1490 = vmatprep.subr.msk.mxu0 %vm424_vm2, %v503_v58  ;;  %v475_v61 = vpop.permute.xlu0 %474 }
 0x105   : > { %v483_v62 = vsel %vm482_vm3, %v475_v61, %v479_v60  ;;  %v485_v63 = vsel %vm482_vm3, %v479_v60, %v475_v61  ;;  %1491 = vmatpush1.msk.msra.mxu0 %vm424_vm2, %v502_v57 }
 0x106   : > { %v500_v0 = vmul.f32 %v1807_v51, %v483_v62  ;;  %v501_v1 = vmul.f32 %v1810_v52, %v485_v63  ;;  %v645_v62 = vld [vmem:[%s2141_s3] sm:$0x3] }
 0x108   : > { %v434_v6 = vpop.permute.xlu1 %433  ;;  %571 = vmatprep.subr.mxu0 %v501_v1  ;;  %v430_v9 = vpop.permute.xlu0 %429 }
 0x109   : > { %v437_v11 = vsel %vm435_vm4, %v430_v9, %v434_v6  ;;  %v439_v12 = vsel %vm435_vm4, %v434_v6, %v430_v9  ;;  %572 = vmatpush1.msra.mxu0 %v500_v0  ;;  %v727_v0 = vld [vmem:[%s2143_s5] sm:$0xff] }
 0x10a   : > { %v455_v13 = vmul.f32 %v1831_v2, %v439_v12  ;;  %v456_v14 = vmul.f32 %v1834_v3, %v437_v11  ;;  %573 = vmatprep.subr.mxu0 %v513_v44  ;;  %v728_v12 = vld [vmem:[%s2143_s5 + $0x8] sm:$0xff] }
 0x10b   : > { %574 = vmatpush1.msra.mxu0 %v511_v45 }
 0x10c   : > { %v432_v15 = vpop.permute.xlu1 %431  ;;  %v428_v16 = vpop.permute.xlu0 %427  ;;  %v519_v21 = vsel %vm424_vm2, %v456_v14, %v509_v41  ;;  %v518_v22 = vsel %vm424_vm2, %v455_v13, %v508_v42 }
 0x10d   : > { %v436_v24 = vsel %vm435_vm4, %v428_v16, %v432_v15  ;;  %v438_v26 = vsel %vm435_vm4, %v432_v15, %v428_v16  ;;  %575 = vmatprep.subr.mxu0 %v519_v21 }
 0x10e   : > { %v453_v27 = vmul.f32 %v1831_v2, %v438_v26  ;;  %v454_v28 = vmul.f32 %v1834_v3, %v436_v24  ;;  %576 = vmatpush1.msra.mxu0 %v518_v22 }
 0x110   : > { %577 = vmatprep.subr.mxu0 %v454_v28 }
 0x111   : > { %578 = vmatpush1.msra.mxu0 %v453_v27 }
 0x112   : > { %1492 = vmatmul.mubr.msk.f32.vlgmr.msra.gmra.mxu0 %vm534_vm5, %v520_v29  ;;  %1519 = vmatprep.subr.mxu0 %v1616_v46 }
 0x113   : > { %617 = vmatprep.mubr.f32.mxu0 %v1616_v46 }
 0x116   : > { %1493 = vmatmul.mubr.msk.f32.gmra.mxu0 %vm534_vm5, %v521_v30  ;;  %vm1147_vm5 = vcmp.lt.s32.totalorder %v1735_v10, 126 }
 0x117   : > { %1523 = vmatprep.mubr.msk.f32.mxu0 %vm1619_vm6, %v1616_v46  ;;  %vm1081_vm6 = vcmp.lt.s32.totalorder %v1735_v10, 2 }
 0x119   : > { %v532_v33 = vpop.permute.xlu0 %531  ;;  %v527_v36 = vpop.permute.xlu1 %526 }
 0x1d2   : > { %v613_v31 = vpop.f32.mrf.mxu0 }
 0x1d3   : > { %v614_v40 = vadd.f32 %v613_v31, %v527_v36 }
 0x1d4   : > { %v615_v32 = vpop.f32.mrf.mxu0 }
 0x1d5   : > { %v616_v38 = vadd.f32 %v615_v32, %v527_v36  ;;  %v1868_v47 = vmax.f32 %v614_v40, 0.0 }
 0x1d6   : > { %v619_v34 = vpop.f32.mrf.mxu0 }
 0x1d7   : > { %v620_v35 = vadd.f32 %v619_v34, %v532_v33  ;;  %v1862_v43 = vmax.f32 %v616_v38, 0.0 }
 0x1d8   : > { %v621_v37 = vpop.f32.mrf.mxu0 }
 0x1d9   : > { %v622_v39 = vadd.f32 %v621_v37, %v532_v33  ;;  %v1858_v41 = vmax.f32 %v620_v35, 0.0  ;;  %v634_v48 = vadd.f32 %v1862_v43, %v1868_v47  ;;  %v628_v49 = vmax.f32 %v1868_v47, %v1862_v43 }
 0x1db   : > { %v1860_v42 = vmax.f32 %v622_v39, 0.0 }
 0x1dd   : > { %v637_v44 = vadd.f32 %v1860_v42, %v1858_v41  ;;  %v631_v45 = vmax.f32 %v1858_v41, %v1860_v42 }
 0x1df   : > { %638 = vadd.xlane.f32.xlu1 %v637_v44  ;;  %632 = vmax.xlane.f32.xlu0 %v631_v45 }
 0x1e3   : > { %635 = vadd.xlane.f32.xlu0 %v634_v48  ;;  %629 = vmax.xlane.f32.xlu1 %v628_v49 }
 0x1f4   : > { %733 = vperm.xlu1 %1571, %v729_v50  }
 0x1f8   : > { %738 = vperm.xlu1 %1571, %v730_v53  }
 0x1f9   : > { %649 = vperm.xlu0 %1570, %v646_v54  }
 0x268   : > { %v639_v55 = vpop.xlane.xlu1 %638  ;;  %v633_v56 = vpop.xlane.xlu0 %632 }
 0x269   : > { %v641_v57 = vmul.f32 0.00390625, %v639_v55 }
 0x26b   : > { %v644_v58 = vsel %vm642_vm7, %v633_v56, %v641_v57 }
 0x26c   : > { %1520 = vmatpush3.msra.mxu0 %v644_v58  ;;  %v636_v59 = vpop.xlane.xlu0 %635  ;;  %v630_v61 = vpop.xlane.xlu1 %629 }
 0x26d   : > { %v640_v60 = vmul.f32 0.00390625, %v636_v59  ;;  %1521 = vmatprep.subr.mxu0 %v1616_v46 }
 0x26f   : > { %v643_v63 = vsel %vm642_vm7, %v630_v61, %v640_v60 }
 0x270   : > { %1522 = vmatpush3.msra.mxu0 %v643_v63  ;;  %v734_v13 = vpop.permute.xlu1 %733 }
 0x271   : > { %1524 = vmatmul.mubr.msk.f32.vlgmr.msra.gmra.mxu0 %vm652_vm8, %v645_v62 }
 0x272   : > { %1528 = vmatprep.mubr.msk.f32.mxu0 %vm741_vm9, %v727_v0 }
 0x274   : > { %v650_v1 = vpop.permute.xlu0 %649  ;;  %v739_v14 = vpop.permute.xlu1 %738 }
 0x331   : > { %v722_v6 = vpop.f32.mrf.mxu0 }
 0x332   : > { %v723_v9 = vadd.f32 %v722_v6, %v650_v1 }
 0x333   : > { %v1525_v11 = vpop.f32.mrf.mxu0 }
 0x334   : > { %v726_v46 = vmax.f32 %v723_v9, 0.0 }
 0x336   : > { %1526 = vmatprep.subr.msk.mxu0 %vm748_vm10, %v726_v46 }
 0x337   : > { %1527 = vmatpush3.msk.msra.mxu0 %vm748_vm10, %v726_v46 }
 0x338   : > { %1529 = vmatmul.mubr.msk.f32.vlgmr.msra.gmra.mxu0 %vm741_vm9, %v728_v12 }
 0x3f8   : > { %v1530_v15 = vpop.f32.mrf.mxu0 }
 0x3f9   : > { %v824_v16 = vadd.f32 %v1530_v15, %v739_v14 }
 0x3fa   : > { %v818_v21 = vpop.f32.mrf.mxu0 }
 0x3fb   : > { %v819_v22 = vadd.f32 %v818_v21, %v734_v13  ;;  %831 = vrot.lane.b32.xlu1 %v824_v16, %s1615_s23 }
 0x3fd   : > { %829 = vrot.lane.b32.xlu0 %v819_v22, %s1615_s23 }
 0x46d   : > { %v832_v24 = vpop.permute.xlu1 %831 }
 0x46e   : > { %v836_v26 = vadd.f32 %v832_v24, %v824_v16 }
 0x46f   : > { %v830_v27 = vpop.permute.xlu0 %829 }
 0x470   : > { %v838_v28 = vsub.f32 0.0, %v836_v26  ;;  %v835_v29 = vadd.f32 %v830_v27, %v819_v22 }
 0x472   : > { %v841_v30 = vmul.f32 1.442695, %v838_v28  ;;  %v837_v31 = vsub.f32 0.0, %v835_v29 }
 0x474   : > { %1573 = vpow2.f32 %v841_v30  ;;  %v839_v32 = vmul.f32 1.442695, %v837_v31 }
 0x476   : > { %1575 = vpow2.f32 %v839_v32  ;;  %v1498_v32 = vld [vmem:[%s2146_s8 + $0x1] ss:$8 sm:$0x3] }
 0x481   : > { %v1574_v33 = vpop.eup %1573 }
 0x482   : > { %v844_v34 = vadd.f32 1.0, %v1574_v33  ;;  %v1499_v33 = vld [vmem:[%s2146_s8 + $0x5] ss:$8 sm:$0x3] }
 0x483   : > { %v1576_v35 = vpop.eup %1575 }
 0x484   : > { %1577 = vrcp.f32 %v844_v34  ;;  %v843_v36 = vadd.f32 1.0, %v1576_v35 }
 0x486   : > { %1579 = vrcp.f32 %v843_v36  ;;  %v1500_v36 = vld [vmem:[%s2146_s8 + $0x6] ss:$8 sm:$0x3] }
 0x491   : > { %v1578_v37 = vpop.eup %1577 }
 0x492   : > { %856 = vperm.xlu1 %1571, %v1578_v37   ;;  %v930_v37 = vrot.slane %v1498_v32, %v1720_v4 }
 0x493   : > { %v1580_v38 = vpop.eup %1579 }
 0x494   : > { %851 = vperm.xlu0 %1570, %v1580_v38   ;;  %v934_v38 = vrot.slane %v1498_v32, %v1722_v5 }
 0x50d   : > { %v857_v39 = vpop.permute.xlu1 %856 }
 0x50e   : > { %v1899_v44 = vmul.f32 %v857_v39, %v1858_v41  ;;  %v1902_v45 = vmul.f32 %v857_v39, %v1860_v42  ;;  %v972_v39 = vrot.slane %v1499_v33, %v1720_v4 }
 0x50f   : > { %v852_v40 = vpop.permute.xlu0 %851 }
 0x510   : > { %v1905_v48 = vmul.f32 %v852_v40, %v1868_v47  ;;  %v1908_v49 = vmul.f32 %v852_v40, %v1862_v43 }
 0x512   : > { %v863_v50 = vmax.f32 %v1905_v48, %v1899_v44  ;;  %v870_v53 = vmax.f32 %v1908_v49, %v1902_v45  ;;  %v877_v54 = vadd.f32 %v1899_v44, %v1905_v48  ;;  %v884_v41 = vadd.f32 %v1902_v45, %v1908_v49 }
 0x514   : > { %v864_v42 = vrot.slane %v863_v50, 4  ;;  %v871_v55 = vrot.slane %v870_v53, 4  ;;  %v878_v56 = vrot.slane %v877_v54, 4  ;;  %v885_v47 = vrot.slane %v884_v41, 4 }
 0x516   : > { %v865_v57 = vmax.f32 %v863_v50, %v864_v42  ;;  %v872_v58 = vmax.f32 %v870_v53, %v871_v55  ;;  %v879_v43 = vadd.f32 %v878_v56, %v877_v54  ;;  %v886_v59 = vadd.f32 %v885_v47, %v884_v41  ;;  %v903_v54 = vld [vmem:[%s2146_s8] ss:$8 sm:$0x3] }
 0x517   : > { %v976_v53 = vrot.slane %v1499_v33, %v1722_v5  ;;  %v994_v47 = vrot.slane %v1500_v36, %v1720_v4 }
 0x518   : > { %v866_v60 = vrot.slane %v865_v57, 2  ;;  %v873_v61 = vrot.slane %v872_v58, 2  ;;  %v880_v62 = vrot.slane %v879_v43, 2  ;;  %v887_v63 = vrot.slane %v886_v59, 2 }
 0x51a   : > { %v867_v0 = vmax.f32 %v865_v57, %v866_v60  ;;  %v874_v1 = vmax.f32 %v872_v58, %v873_v61  ;;  %v881_v6 = vadd.f32 %v880_v62, %v879_v43  ;;  %v888_v9 = vadd.f32 %v887_v63, %v886_v59 }
 0x51b   : > { %v908_v61 = vrot.slane %v903_v54, %v1720_v4  ;;  %v912_v62 = vrot.slane %v903_v54, %v1722_v5 }
 0x51c   : > { %v868_v11 = vrot.slane %v867_v0, 1  ;;  %v875_v46 = vrot.slane %v874_v1, 1  ;;  %v882_v12 = vrot.slane %v881_v6, 1  ;;  %v889_v13 = vrot.slane %v888_v9, 1 }
 0x51e   : > { %v883_v14 = vadd.f32 %v882_v12, %v881_v6  ;;  %v890_v15 = vadd.f32 %v889_v13, %v888_v9  ;;  %v869_v16 = vmax.f32 %v867_v0, %v868_v11  ;;  %v876_v21 = vmax.f32 %v874_v1, %v875_v46 }
 0x51f   : > { %v998_v1 = vrot.slane %v1500_v36, %v1722_v5 }
 0x520   : > { %v891_v22 = vmul.f32 0.0625, %v883_v14  ;;  %v892_v24 = vmul.f32 0.0625, %v890_v15 }
 0x522   : > { %v895_v26 = vsel %vm893_vm11, %v876_v21, %v892_v24  ;;  %v894_v27 = vsel %vm893_vm11, %v869_v16, %v891_v22 }
 0x523   : > { %919 = vrot.lane.b32.xlu1 %v895_v26, %s1620_s11  ;;  %917 = vrot.lane.b32.xlu0 %v894_v27, %s1620_s11  ;;  %v950_v41 = vmul.f32 %v895_v26, %v1731_v8  ;;  %v949_v59 = vmul.f32 %v894_v27, %v1728_v7  ;;  %s1624_s11 = smov 125  }
 0x525   : > { %v1018_v6 = vrot.slane %v950_v41, 2 }
 0x527   : > { %961 = vrot.lane.b32.xlu1 %v895_v26, %s1621_s12  ;;  %959 = vrot.lane.b32.xlu0 %v894_v27, %s1621_s12  ;;  %s1625_s12 = smov 126  }
 0x52b   : > { %941 = vrot.lane.b32.xlu1 %v895_v26, %s1613_s27  ;;  %939 = vrot.lane.b32.xlu0 %v894_v27, %s1613_s27 }
 0x52f   : > { %983 = vrot.lane.b32.xlu1 %v895_v26, %s1622_s15  ;;  %981 = vrot.lane.b32.xlu0 %v894_v27, %s1622_s15  ;;  %s1626_s15 = smov 2  }
 0x533   : > { %898 = vrot.lane.b32.xlu1 %v895_v26, %s1623_s18  ;;  %896 = vrot.lane.b32.xlu0 %v894_v27, %s1623_s18  ;;  %s1627_s18 = smov 3  }
 0x537   : > { %953 = vrot.lane.b32.xlu1 %v895_v26, %s1614_s28  ;;  %951 = vrot.lane.b32.xlu0 %v894_v27, %s1614_s28 }
 0x595   : > { %v920_v28 = vpop.permute.xlu1 %919  ;;  %v918_v29 = vpop.permute.xlu0 %917 }
 0x596   : > { %v922_v40 = vsel %vm921_vm12, %v918_v29, %v920_v28  ;;  %v923_v50 = vsel %vm921_vm12, %v920_v28, %v918_v29 }
 0x597   : > { %v937_v60 = vmul.f32 %v930_v37, %v923_v50  ;;  %v938_v8 = vmul.f32 %v934_v38, %v922_v40 }
 0x599   : > { %v962_v30 = vpop.permute.xlu1 %961  ;;  %v960_v31 = vpop.permute.xlu0 %959  ;;  %v1005_v15 = vrot.slane %v937_v60, 6  ;;  %v1006_v16 = vrot.slane %v938_v8, 6 }
 0x59a   : > { %v964_v58 = vsel %vm963_vm13, %v960_v31, %v962_v30  ;;  %v965_v43 = vsel %vm963_vm13, %v962_v30, %v960_v31 }
 0x59b   : > { %v979_v9 = vmul.f32 %v972_v39, %v964_v58  ;;  %v980_v11 = vmul.f32 %v976_v53, %v965_v43 }
 0x59d   : > { %v942_v34 = vpop.permute.xlu1 %941  ;;  %v940_v35 = vpop.permute.xlu0 %939  ;;  %v1023_v29 = vrot.slane %v979_v9, 6  ;;  %v1024_v30 = vrot.slane %v980_v11, 6 }
 0x59e   : > { %v943_v42 = vsel %vm367_vm0, %v940_v35, %v942_v34  ;;  %v944_v55 = vsel %vm367_vm0, %v942_v34, %v940_v35  ;;  %vm1037_vm0 = vcmask 1045504  }
 0x59f   : > { %v945_v63 = vmul.f32 %v944_v55, %v1749_v17  ;;  %v946_v0 = vmul.f32 %v943_v42, %v1752_v18  ;;  %v1017_v18 = vrot.slane %v949_v59, 2 }
 0x5a1   : > { %v984_v56 = vpop.permute.xlu1 %983  ;;  %v982_v57 = vpop.permute.xlu0 %981  ;;  %v1011_v24 = vrot.slane %v945_v63, 4  ;;  %v1012_v26 = vrot.slane %v946_v0, 4 }
 0x5a2   : > { %v986_v46 = vsel %vm985_vm14, %v982_v57, %v984_v56  ;;  %v987_v7 = vsel %vm985_vm14, %v984_v56, %v982_v57 }
 0x5a3   : > { %v1001_v27 = vmul.f32 %v994_v47, %v986_v46  ;;  %v1002_v28 = vmul.f32 %v998_v1, %v987_v7 }
 0x5a5   : > { %v899_v12 = vpop.permute.xlu1 %898  ;;  %v897_v13 = vpop.permute.xlu0 %896  ;;  %v1029_v54 = vrot.slane %v1001_v27, 4  ;;  %v1030_v41 = vrot.slane %v1002_v28, 4 }
 0x5a6   : > { %v901_v14 = vsel %vm900_vm15, %v897_v13, %v899_v12  ;;  %v902_v17 = vsel %vm900_vm15, %v899_v12, %v897_v13 }
 0x5a7   : > { %v915_v21 = vmul.f32 %v908_v61, %v902_v17  ;;  %v916_v22 = vmul.f32 %v912_v62, %v901_v14 }
 0x5a9   : > { %v1033_v31 = vsel %vm748_vm10, %v915_v21, %v1005_v15  ;;  %v1034_v32 = vsel %vm748_vm10, %v916_v22, %v1006_v16  ;;  %v954_v33 = vpop.permute.xlu1 %953  ;;  %v952_v34 = vpop.permute.xlu0 %951  ;;  %v1502_v15 = vld [vmem:[%s2147_s9 + $0x5] ss:$8 sm:$0x3] }
 0x5aa   : > { %v1035_v35 = vsel %vm424_vm2, %v1033_v31, %v1011_v24  ;;  %v1036_v36 = vsel %vm424_vm2, %v1034_v32, %v1012_v26  ;;  %v955_v37 = vsel %vm403_vm1, %v952_v34, %v954_v33  ;;  %v956_v38 = vsel %vm403_vm1, %v954_v33, %v952_v34 }
 0x5ab   : > { %v957_v39 = vmul.f32 %v955_v37, %v1755_v19  ;;  %v958_v40 = vmul.f32 %v956_v38, %v1758_v20  ;;  %v1039_v50 = vsel %vm1037_vm0, %v1036_v36, %v1018_v6  ;;  %v1038_v53 = vsel %vm1037_vm0, %v1035_v35, %v1017_v18 }
 0x5ac   : > { %v1977_v56 = vmul.f32 %v1039_v50, %v1761_v23  ;;  %v1980_v47 = vmul.f32 %v1038_v53, %v1764_v25  ;;  %vm1177_vm1 = vcmp.lt.s32.totalorder %v1735_v10, 125  ;;  %v1162_v22 = vrot.slane %v1502_v15, %v1722_v5 }
 0x5ad   : > { %v1040_v42 = vsel %vm748_vm10, %v957_v39, %v1023_v29  ;;  %v1041_v55 = vsel %vm748_vm10, %v958_v40, %v1024_v30  ;;  %v1158_v26 = vrot.slane %v1502_v15, %v1720_v4 }
 0x5ae   : > { %v1042_v19 = vsel %vm424_vm2, %v1040_v42, %v1029_v54  ;;  %v1043_v20 = vsel %vm424_vm2, %v1041_v55, %v1030_v41  ;;  %v1236_v43 = vrot.slane %v1977_v56, 6  ;;  %v1235_v60 = vrot.slane %v1980_v47, 6 }
 0x5af   : > { %1175 = vrot.lane.b32.xlu1 %v1043_v20, %s1624_s11  ;;  %1171 = vrot.lane.b32.xlu0 %v1042_v19, %s1624_s11  ;;  %v1122_v57 = vmul.f32 %v1043_v20, %v1761_v23  ;;  %v1121_v58 = vmul.f32 %v1042_v19, %v1764_v25  ;;  %v1503_v25 = vld [vmem:[%s2147_s9 + $0x6] ss:$8 sm:$0x3] }
 0x5b0   : > { %v1188_v62 = vrot.slane %v1503_v25, %v1720_v4  ;;  %v1192_v63 = vrot.slane %v1503_v25, %v1722_v5 }
 0x5b1   : > { %v1239_v59 = vrot.slane %v1122_v57, 6  ;;  %v1237_v8 = vrot.slane %v1121_v58, 6 }
 0x5b3   : > { %1145 = vrot.lane.b32.xlu1 %v1043_v20, %s1625_s12  ;;  %1141 = vrot.lane.b32.xlu0 %v1042_v19, %s1625_s12  ;;  %v1991_v61 = vsel %vm748_vm10, %v1236_v43, %v1239_v59  ;;  %v1996_v23 = vsel %vm748_vm10, %v1235_v60, %v1237_v8 }
 0x5b7   : > { %1129 = vrot.lane.b32.xlu1 %v1043_v20, %s1615_s23  ;;  %1125 = vrot.lane.b32.xlu0 %v1042_v19, %s1615_s23 }
 0x5bb   : > { %1109 = vrot.lane.b32.xlu1 %v1043_v20, %s1617_s24  ;;  %1105 = vrot.lane.b32.xlu0 %v1042_v19, %s1617_s24 }
 0x5bf   : > { %1173 = vrot.lane.b32.xlu1 %v1039_v50, %s1624_s11  ;;  %1169 = vrot.lane.b32.xlu0 %v1038_v53, %s1624_s11  ;;  %s347_s11 = sand.u32 1, %s1603_s13   ;;  %s1512_s13 = sshll.u32 (%p1708_p4), %s1696_s16, 4 }
 0x5c0   : > { %s1402_s22 = scalar_lea.vmem (%p1708_p4), %s2148_s10, %s1512_s13 }
 0x5c3   : > { %1143 = vrot.lane.b32.xlu1 %v1039_v50, %s1625_s12  ;;  %1139 = vrot.lane.b32.xlu0 %v1038_v53, %s1625_s12  ;;  %s1481_s12 = sshll.u32 %s347_s11, 5 }
 0x5c7   : > { %1079 = vrot.lane.b32.xlu1 %v1043_v20, %s1626_s15  ;;  %1075 = vrot.lane.b32.xlu0 %v1042_v19, %s1626_s15 }
 0x5cb   : > { %1127 = vrot.lane.b32.xlu1 %v1039_v50, %s1615_s23  ;;  %1123 = vrot.lane.b32.xlu0 %v1038_v53, %s1615_s23 }
 0x5cf   : > { %1107 = vrot.lane.b32.xlu1 %v1039_v50, %s1617_s24  ;;  %1103 = vrot.lane.b32.xlu0 %v1038_v53, %s1617_s24 }
 0x5d3   : > { %1077 = vrot.lane.b32.xlu1 %v1039_v50, %s1626_s15  ;;  %1073 = vrot.lane.b32.xlu0 %v1038_v53, %s1626_s15  ;;  %s349_s15 = scalar_lea.vmem [#allocation2], %s1481_s12 }
 0x5d7   : > { %1050 = vrot.lane.b32.xlu1 %v1043_v20, %s1627_s18  ;;  %1046 = vrot.lane.b32.xlu0 %v1042_v19, %s1627_s18 }
 0x5db   : > { %1048 = vrot.lane.b32.xlu1 %v1039_v50, %s1627_s18  ;;  %1044 = vrot.lane.b32.xlu0 %v1038_v53, %s1627_s18 }
 0x621   : > { %v1176_v0 = vpop.permute.xlu1 %1175  ;;  %v1172_v1 = vpop.permute.xlu0 %1171 }
 0x622   : > { %v1179_v6 = vsel %vm1177_vm1, %v1172_v1, %v1176_v0  ;;  %v1181_v9 = vsel %vm1177_vm1, %v1176_v0, %v1172_v1 }
 0x623   : > { %v1197_v11 = vmul.f32 %v1188_v62, %v1179_v6  ;;  %v1198_v46 = vmul.f32 %v1192_v63, %v1181_v9  ;;  %v1501_v9 = vld [vmem:[%s2147_s9 + $0x1] ss:$8 sm:$0x3] }
 0x624   : > { %v1096_v15 = vrot.slane %v1501_v9, %v1722_v5 }
 0x625   : > { %v1267_v7 = vrot.slane %v1197_v11, 4  ;;  %v1146_v12 = vpop.permute.xlu1 %1145  ;;  %v1142_v13 = vpop.permute.xlu0 %1141  ;;  %v1269_v14 = vrot.slane %v1198_v46, 4 }
 0x626   : > { %v1151_v24 = vsel %vm1147_vm5, %v1146_v12, %v1142_v13  ;;  %v1149_v27 = vsel %vm1147_vm5, %v1142_v13, %v1146_v12 }
 0x627   : > { %1504 = vmatprep.subr.msk.mxu1 %vm748_vm10, %v1269_v14  ;;  %v1168_v30 = vmul.f32 %v1162_v22, %v1151_v24  ;;  %v1167_v35 = vmul.f32 %v1158_v26, %v1149_v27 }
 0x628   : > { %1505 = vmatpush1.msk.msra.mxu1 %vm748_vm10, %v1267_v7 }
 0x629   : > { %v1130_v17 = vpop.permute.xlu1 %1129  ;;  %v1126_v18 = vpop.permute.xlu0 %1125  ;;  %v1253_v40 = vrot.slane %v1168_v30, 2  ;;  %v1251_v19 = vrot.slane %v1167_v35, 2 }
 0x62a   : > { %v1132_v20 = vsel %vm482_vm3, %v1126_v18, %v1130_v17  ;;  %v1134_v57 = vsel %vm482_vm3, %v1130_v17, %v1126_v18 }
 0x62b   : > { %v1138_v6 = vmul.f32 %v1134_v57, %v1810_v52 }
 0x62d   : > { %v1110_v16 = vpop.permute.xlu1 %1109  ;;  %v1106_v21 = vpop.permute.xlu0 %1105 }
 0x62e   : > { %v1112_v58 = vsel %vm435_vm4, %v1106_v21, %v1110_v16  ;;  %v1114_v0 = vsel %vm435_vm4, %v1110_v16, %v1106_v21 }
 0x62f   : > { %v1118_v12 = vmul.f32 %v1112_v58, %v1834_v3  ;;  %v1117_v13 = vmul.f32 %v1114_v0, %v1831_v2 }
 0x631   : > { %v1174_v28 = vpop.permute.xlu1 %1173  ;;  %v1170_v29 = vpop.permute.xlu0 %1169  ;;  %v1221_v30 = vrot.slane %v1117_v13, 4 }
 0x632   : > { %v1178_v31 = vsel %vm1177_vm1, %v1170_v29, %v1174_v28  ;;  %v1180_v32 = vsel %vm1177_vm1, %v1174_v28, %v1170_v29  ;;  %v1223_v28 = vrot.slane %v1118_v12, 4  ;;  %v1092_v29 = vrot.slane %v1501_v9, %v1720_v4 }
 0x633   : > { %v1195_v33 = vmul.f32 %v1188_v62, %v1178_v31  ;;  %v1196_v34 = vmul.f32 %v1192_v63, %v1180_v32 }
 0x635   : > { %v1265_v36 = vrot.slane %v1195_v33, 4  ;;  %v1266_v37 = vrot.slane %v1196_v34, 4  ;;  %v1144_v38 = vpop.permute.xlu1 %1143  ;;  %v1140_v39 = vpop.permute.xlu0 %1139 }
 0x636   : > { %v1148_v50 = vsel %vm1147_vm5, %v1140_v39, %v1144_v38  ;;  %v1150_v53 = vsel %vm1147_vm5, %v1144_v38, %v1140_v39  ;;  %v1280_v39 = vsel %vm748_vm10, %v1223_v28, %v1236_v43 }
 0x637   : > { %v1165_v54 = vmul.f32 %v1158_v26, %v1148_v50  ;;  %v1166_v41 = vmul.f32 %v1162_v22, %v1150_v53  ;;  %v1270_v42 = vsel %vm424_vm2, %v1266_v37, %v1269_v14  ;;  %v1268_v55 = vsel %vm424_vm2, %v1265_v36, %v1267_v7 }
 0x638   : > { %1302 = vmatprep.subr.mxu1 %v1270_v42  ;;  %v1284_v63 = vsel %vm424_vm2, %v1253_v40, %v1266_v37  ;;  %v1283_v1 = vsel %vm424_vm2, %v1251_v19, %v1265_v36  ;;  %v1137_v7 = vmul.f32 %v1132_v20, %v1807_v51 }
 0x639   : > { %v1249_v59 = vrot.slane %v1165_v54, 2  ;;  %v1250_v8 = vrot.slane %v1166_v41, 2  ;;  %v1080_v25 = vpop.permute.xlu1 %1079  ;;  %1303 = vmatpush1.msra.mxu1 %v1268_v55  ;;  %v1076_v62 = vpop.permute.xlu0 %1075 }
 0x63a   : > { %1304 = vmatprep.subr.mxu1 %v1284_v63  ;;  %v1083_v24 = vsel %vm1081_vm6, %v1076_v62, %v1080_v25  ;;  %v1085_v31 = vsel %vm1081_vm6, %v1080_v25, %v1076_v62 }
 0x63b   : > { %1305 = vmatpush1.msra.mxu1 %v1283_v1  ;;  %v1254_v11 = vsel %vm1037_vm0, %v1250_v8, %v1253_v40  ;;  %v1252_v46 = vsel %vm1037_vm0, %v1249_v59, %v1251_v19  ;;  %v1282_v18 = vsel %vm1037_vm0, %v1138_v6, %v1250_v8  ;;  %v1281_v22 = vsel %vm1037_vm0, %v1137_v7, %v1249_v59 }
 0x63c   : > { %1306 = vmatprep.subr.mxu1 %v1254_v11  ;;  %v1102_v34 = vmul.f32 %v1096_v15, %v1083_v24  ;;  %v1101_v38 = vmul.f32 %v1092_v29, %v1085_v31 }
 0x63d   : > { %v1128_v14 = vpop.permute.xlu1 %1127  ;;  %1307 = vmatpush1.msra.mxu1 %v1252_v46  ;;  %v1124_v17 = vpop.permute.xlu0 %1123 }
 0x63e   : > { %v1131_v16 = vsel %vm482_vm3, %v1124_v17, %v1128_v14  ;;  %v1133_v21 = vsel %vm482_vm3, %v1128_v14, %v1124_v17  ;;  %1308 = vmatprep.subr.mxu1 %v1282_v18  ;;  %vm1052_vm3 = vcmp.lt.s32.totalorder %v1735_v10, 3  ;;  %v1205_v19 = vrot.slane %v1101_v38, 2  ;;  %v1285_v17 = vld [vmem:[%s2145_s7] sm:$0xff] }
 0x63f   : > { %v1135_v26 = vmul.f32 %v1131_v16, %v1807_v51  ;;  %v1136_v27 = vmul.f32 %v1133_v21, %v1810_v52  ;;  %1309 = vmatpush1.msra.mxu1 %v1281_v22  ;;  %v1057_v52 = vld [vmem:[%s2147_s9] ss:$8 sm:$0x3] }
 0x640   : > { %v1066_v43 = vrot.slane %v1057_v52, %v1722_v5 }
 0x641   : > { %v1108_v32 = vpop.permute.xlu1 %1107  ;;  %1310 = vmatprep.subr.mxu1 %v1136_v27  ;;  %v1104_v33 = vpop.permute.xlu0 %1103 }
 0x642   : > { %v1111_v35 = vsel %vm435_vm4, %v1104_v33, %v1108_v32  ;;  %v1113_v51 = vsel %vm435_vm4, %v1108_v32, %v1104_v33  ;;  %1311 = vmatpush1.msra.mxu1 %v1135_v26 }
 0x643   : > { %v1115_v36 = vmul.f32 %v1113_v51, %v1831_v2  ;;  %v1116_v37 = vmul.f32 %v1111_v35, %v1834_v3  ;;  %1312 = vmatprep.subr.mxu1 %v1991_v61  ;;  %v1279_v2 = vsel %vm748_vm10, %v1221_v30, %v1235_v60  ;;  %v1062_v3 = vrot.slane %v1057_v52, %v1720_v4 }
 0x644   : > { %1313 = vmatpush1.msra.mxu1 %v1996_v23  ;;  %v1207_v61 = vrot.slane %v1102_v34, 2 }
 0x645   : > { %v1219_v40 = vrot.slane %v1115_v36, 4  ;;  %v1220_v50 = vrot.slane %v1116_v37, 4  ;;  %v1078_v53 = vpop.permute.xlu1 %1077  ;;  %v1074_v54 = vpop.permute.xlu0 %1073  ;;  %1314 = vmatprep.subr.mxu1 %v1280_v39 }
 0x646   : > { %v1082_v23 = vsel %vm1081_vm6, %v1074_v54, %v1078_v53  ;;  %v1084_v56 = vsel %vm1081_vm6, %v1078_v53, %v1074_v54  ;;  %1315 = vmatpush1.msra.mxu1 %v1279_v2 }
 0x647   : > { %v1099_v41 = vmul.f32 %v1092_v29, %v1084_v56  ;;  %v1100_v42 = vmul.f32 %v1096_v15, %v1082_v23  ;;  %v1224_v55 = vsel %vm424_vm2, %v1220_v50, %v1223_v28  ;;  %v1222_v47 = vsel %vm424_vm2, %v1219_v40, %v1221_v30 }
 0x648   : > { %1316 = vmatprep.subr.mxu1 %v1224_v55  ;;  %v1278_v59 = vsel %vm424_vm2, %v1207_v61, %v1220_v50  ;;  %v1277_v25 = vsel %vm424_vm2, %v1205_v19, %v1219_v40  ;;  %vm1286_vm2 = vcmask 801792  }
 0x649   : > { %v1203_v60 = vrot.slane %v1099_v41, 2  ;;  %v1204_v20 = vrot.slane %v1100_v42, 2  ;;  %v1051_v57 = vpop.permute.xlu1 %1050  ;;  %v1047_v58 = vpop.permute.xlu0 %1046  ;;  %1317 = vmatpush1.msra.mxu1 %v1222_v47 }
 0x64a   : > { %v1054_v8 = vsel %vm1052_vm3, %v1047_v58, %v1051_v57  ;;  %v1056_v5 = vsel %vm1052_vm3, %v1051_v57, %v1047_v58  ;;  %1318 = vmatprep.subr.mxu1 %v1278_v59 }
 0x64b   : > { %v1071_v62 = vmul.f32 %v1062_v3, %v1056_v5  ;;  %v1072_v63 = vmul.f32 %v1066_v43, %v1054_v8  ;;  %1319 = vmatpush1.msra.mxu1 %v1277_v25  ;;  %v1208_v0 = vsel %vm1037_vm0, %v1204_v20, %v1207_v61  ;;  %v1206_v1 = vsel %vm1037_vm0, %v1203_v60, %v1205_v19 }
 0x64c   : > { %1320 = vmatprep.subr.mxu1 %v1208_v0 }
 0x64d   : > { %v1049_v6 = vpop.permute.xlu1 %1048  ;;  %v1045_v9 = vpop.permute.xlu0 %1044  ;;  %1321 = vmatpush1.msra.mxu1 %v1206_v1  ;;  %v1276_v11 = vsel %vm1037_vm0, %v1072_v63, %v1204_v20  ;;  %v1275_v46 = vsel %vm1037_vm0, %v1071_v62, %v1203_v60 }
 0x64e   : > { %v1053_v7 = vsel %vm1052_vm3, %v1045_v9, %v1049_v6  ;;  %v1055_v12 = vsel %vm1052_vm3, %v1049_v6, %v1045_v9  ;;  %1322 = vmatprep.subr.mxu1 %v1276_v11 }
 0x64f   : > { %v1069_v13 = vmul.f32 %v1062_v3, %v1055_v12  ;;  %v1070_v14 = vmul.f32 %v1066_v43, %v1053_v7  ;;  %1323 = vmatpush1.msra.mxu1 %v1275_v46 }
 0x651   : > { %1324 = vmatprep.subr.mxu1 %v1070_v14 }
 0x652   : > { %1325 = vmatpush1.msra.mxu1 %v1069_v13 }
 0x653   : > { %1506 = vmatmul.mubr.msk.f32.vlgmr.msra.gmra.mxu1 %vm1286_vm2, %v1285_v17 }
 0x713   : > { %v1360_v18 = vpop.f32.mrf.mxu1 }
 0x714   : > { %v1365_v15 = vsub.f32 0.0, %v1360_v18 }
 0x715   : > { %v1362_v16 = vpop.f32.mrf.mxu1 }
 0x716   : > { %v1367_v21 = vmul.f32 1.442695, %v1365_v15  ;;  %v1366_v22 = vsub.f32 0.0, %v1362_v16 }
 0x718   : > { %1581 = vpow2.f32 %v1367_v21  ;;  %v1369_v10 = vmul.f32 1.442695, %v1366_v22 }
 0x71a   : > { %1583 = vpow2.f32 %v1369_v10 }
 0x725   : > { %v1582_v24 = vpop.eup %1581 }
 0x726   : > { %v1371_v26 = vadd.f32 1.0, %v1582_v24 }
 0x727   : > { %v1584_v27 = vpop.eup %1583 }
 0x728   : > { %1585 = vrcp.f32 %v1371_v26  ;;  %v1372_v28 = vadd.f32 1.0, %v1584_v27 }
 0x72a   : > { %1587 = vrcp.f32 %v1372_v28 }
 0x735   : > { %v1586_v29 = vpop.eup %1585 }
 0x736   : > { %v1380_v30 = vrot.slane %v1586_v29, %v1720_v4 }
 0x737   : > { %v1588_v31 = vpop.eup %1587 }
 0x738   : > { %v1385_v32 = vmul.f32 %v1380_v30, %v1905_v48  ;;  %v1387_v33 = vmul.f32 %v1380_v30, %v1899_v44  ;;  %v1384_v34 = vrot.slane %v1588_v31, %v1720_v4  ;;  %1399 = sbr.rel (!%p1708_p4) target bundleno = 1861 (0x745), region = 64 }
 0x73a   : > { %1389 = vst [vmem:[%s349_s15] sm:$0xff] %v1385_v32  ;;  %1391 = vst [vmem:[%s349_s15 + $0x10] sm:$0xff] %v1387_v33  ;;  %v1386_v35 = vmul.f32 %v1384_v34, %v1908_v49  ;;  %v1388_v51 = vmul.f32 %v1384_v34, %v1902_v45 }
 0x73c   : > { %1390 = vst [vmem:[%s349_s15 + $0x8] sm:$0xff] %v1386_v35  ;;  %1392 = vst [vmem:[%s349_s15 + $0x18] sm:$0xff] %v1388_v51 }
 0x741   : > { %v1415_v52 = vld [vmem:[%s349_s15] sm:$0xff]  ;;  %v1419_v36 = vld [vmem:[%s349_s15 + $0x10] sm:$0xff] }
 0x742   : > { %1416 = vst [vmem:[%s1402_s22] sm:$0xff] %v1415_v52  ;;  %1420 = vst [vmem:[%s1402_s22 + $0x20] sm:$0xff] %v1419_v36 }
 0x743   : > { %v1417_v48 = vld [vmem:[%s349_s15 + $0x8] sm:$0xff]  ;;  %v1421_v4 = vld [vmem:[%s349_s15 + $0x18] sm:$0xff] }
 0x744   : > { %1418 = vst [vmem:[%s1402_s22 + $0x8] sm:$0xff] %v1417_v48  ;;  %1422 = vst [vmem:[%s1402_s22 + $0x28] sm:$0xff] %v1421_v4 }
 0x745 PF: > { %p17_p8 = scmp.ge.s32.totalorder %s1698_s17, 4   ;;  %s2150_s13 = smov %s1607_s14 }
 0x746   : > { %s2151_s14 = smov %s1706_s20  ;;  %s2152_s15 = smov %s1698_s17 }
 0x747   :  { %19 = sbr.rel (!%p17_p8) target bundleno = 2 (0x2), region = 125 }

</bundles_post_ra>
